<compile_context>
chip_gen: v7x
topology: tpu7x:2x2x1
jax: 0.10.0
libtpu: 0.0.40
codegen_flags: <defaults>
</compile_context>

<pallas_src>
import jax
import jax.numpy as jnp
from jax import lax
from jax.experimental import pallas as pl
from jax.experimental.pallas import tpu as pltpu


def _round_up(x, m):
    return (x + m - 1) // m * m


# ---------------------------------------------------------------------------
# Kernels
# ---------------------------------------------------------------------------
def _conv_relu_kernel(p_ref, w_ref, b_ref, o_ref):
    # p_ref: (1, K, tm) bf16 im2col columns (K = 9*Cin taps, tm output pixels in lanes)
    # w_ref: (Cout, K) bf16 ; b_ref: (Cout, 1) f32 ; o_ref: (1, Cout, tm) bf16
    y = jnp.dot(w_ref[...], p_ref[0], preferred_element_type=jnp.float32)
    y = y + b_ref[...]
    o_ref[0] = jnp.maximum(y, 0.0).astype(o_ref.dtype)


def _fc_kernel(x_ref, w_ref, b_ref, o_ref, acc_ref):
    # Reduction over the K (feature) grid axis; fp32 accumulator resident in VMEM.
    @pl.when(pl.program_id(0) == 0)
    def _():
        acc_ref[...] = jnp.zeros_like(acc_ref)

    # relu(flatten(x)) from the module is idempotent here (conv outputs >= 0 and
    # the K zero padding stays zero), so no extra maximum is emitted.
    acc_ref[...] += jnp.dot(x_ref[...], w_ref[...],
                            preferred_element_type=jnp.float32)

    @pl.when(pl.program_id(0) == pl.num_programs(0) - 1)
    def _():
        o_ref[...] = acc_ref[...] + b_ref[...]


# ---------------------------------------------------------------------------
# Tiling heuristics (per review: big tiles, per-layer sizing, v5e VMEM cap)
# ---------------------------------------------------------------------------
def _conv_tile_m(K, Mp):
    # conv0 (K=27): 8192-wide tiles (~0.5 MB patch block); conv1/conv2 (K=144/288):
    # 4096 (~1.2/2.4 MB patch block) -> <6 MB double-buffered worst case, fits
    # v5e's 16 MiB scoped-VMEM default.  At the real 256x256 config this yields
    # >=1 M tile per image; the batch grid axis keeps v7x megacore occupied.
    cap = 8192 if K <= 64 else 4096
    return min(cap, Mp)


def _fc_tile_k(D, Dout):
    # Target ~1-2 MB weight blocks per grid step (review: 4096-8192 for Dout=64),
    # scaled down automatically for larger 2*latent_dim so blocks stay VMEM-safe.
    cap = max(512, min(8192, ((1 << 20) // max(Dout, 1)) // 128 * 128))
    return min(cap, _round_up(D, 128))


# ---------------------------------------------------------------------------
# Wrappers
# ---------------------------------------------------------------------------
def _im2col_nchw(x):
    # x: (N, Cin, H, W) -> patches (N, 9*Cin, Ho*Wo). Row order is (ci, kh, kw),
    # matching the (Cout, Cin, 3, 3) weight flattening in prepare_params.
    N, C, H, W = x.shape
    Ho = (H - 3) // 2 + 1
    Wo = (W - 3) // 2 + 1
    taps = [x[:, :, kh:kh + 2 * Ho - 1:2, kw:kw + 2 * Wo - 1:2]
            for kh in range(3) for kw in range(3)]
    p = jnp.stack(taps, axis=2)                       # (N, Cin, 9, Ho, Wo)
    return p.reshape(N, 9 * C, Ho * Wo), Ho, Wo


def conv_relu(x, wmat, bias):
    """Conv2d(k=3, s=2, p=0) + ReLU.  x: (N,Cin,H,W) bf16, wmat: (Cout, 9*Cin) bf16."""
    N = x.shape[0]
    Cout, K = wmat.shape
    patches, Ho, Wo = _im2col_nchw(x)
    M = Ho * Wo
    Mp = _round_up(M, 128)                            # lane-align the pixel axis
    if Mp != M:
        patches = jnp.pad(patches, ((0, 0), (0, 0), (0, Mp - M)))
    tm = _conv_tile_m(K, Mp)

    out = pl.pallas_call(
        _conv_relu_kernel,
        out_shape=jax.ShapeDtypeStruct((N, Cout, Mp), jnp.bfloat16),
        grid=(N, pl.cdiv(Mp, tm)),
        in_specs=[pl.BlockSpec((1, K, tm), lambda n, m: (n, 0, m)),
                  pl.BlockSpec((Cout, K), lambda n, m: (0, 0)),
                  pl.BlockSpec((Cout, 1), lambda n, m: (0, 0))],
        out_specs=pl.BlockSpec((1, Cout, tm), lambda n, m: (n, 0, m)),
        compiler_params=pltpu.CompilerParams(
            dimension_semantics=("parallel", "parallel")),
    )(patches, wmat, bias)
    return out[:, :, :M].reshape(N, Cout, Ho, Wo)


def fc_head(enc, w_pad, b, tk):
    """Linear(D -> 2*latent_dim).  enc: (N, D) bf16, w_pad: (Dp, 2L) bf16 (pre-padded)."""
    N, D = enc.shape
    Dp, Dout = w_pad.shape
    if Dp != D:
        # Explicit zero padding is required on the K reduction (review note); the
        # activation is tiny so this per-call pad is negligible.
        enc = jnp.pad(enc, ((0, 0), (0, Dp - D)))

    out = pl.pallas_call(
        _fc_kernel,
        out_shape=jax.ShapeDtypeStruct((N, Dout), jnp.float32),
        grid=(Dp // tk,),
        in_specs=[pl.BlockSpec((N, tk), lambda k: (0, k)),
                  pl.BlockSpec((tk, Dout), lambda k: (k, 0)),
                  pl.BlockSpec((1, Dout), lambda k: (0, 0))],
        out_specs=pl.BlockSpec((N, Dout), lambda k: (0, 0)),
        scratch_shapes=[pltpu.VMEM((N, Dout), jnp.float32)],
        compiler_params=pltpu.CompilerParams(
            dimension_semantics=("arbitrary",)),
    )(enc.astype(jnp.bfloat16), w_pad, b)
    return out


def prepare_params(params):
    """One-time weight preprocessing, hoisted out of the per-call forward path."""
    conv = []
    for (w, b) in params["conv"]:
        cout = w.shape[-1]
        # HWIO (3,3,Cin,Cout) -> (Cout, Cin, 3, 3) -> (Cout, 9*Cin), bf16 for the MXU.
        wmat = jnp.transpose(w, (3, 2, 0, 1)).reshape(cout, -1).astype(jnp.bfloat16)
        conv.append((wmat, b.reshape(cout, 1).astype(jnp.float32)))
    w_fc = params["w_fc"].astype(jnp.float32)
    D, Dout = w_fc.shape
    tk = _fc_tile_k(D, Dout)
    Dp = _round_up(D, tk)
    w_fc_bf16 = jnp.pad(w_fc, ((0, Dp - D), (0, 0))).astype(jnp.bfloat16)
    return {"conv": conv,
            "w_fc": w_fc_bf16,
            "b_fc": params["b_fc"].reshape(1, Dout).astype(jnp.float32),
            "fc_tk": tk,
            "latent_dim": params["latent_dim"]}


def encoder_forward(x_nchw, prep):
    h = x_nchw.astype(jnp.bfloat16)
    for (wmat, bias) in prep["conv"]:
        h = conv_relu(h, wmat, bias)
    enc = h.reshape(h.shape[0], -1)            # nn.Flatten() on NCHW, PyTorch order
    out = fc_head(enc, prep["w_fc"], prep["b_fc"], prep["fc_tk"])
    L = prep["latent_dim"]
    return out[:, :L], out[:, L:]              # torch.split(x, latent_dim, dim=1)


# ---------------------------------------------------------------------------
# Deterministic synthetic parameters (shapes follow the module's __init__)
# ---------------------------------------------------------------------------
def init_params(key, input_channels, latent_dim, fc_in):
    chans = [input_channels, 16, 32, 64]
    keys = jax.random.split(key, 4)
    conv = []
    for i in range(3):
        cin, cout = chans[i], chans[i + 1]
        kw_, kb_ = jax.random.split(keys[i])
        fan_in = 9 * cin
        w = jax.random.normal(kw_, (3, 3, cin, cout), jnp.float32) / jnp.sqrt(fan_in)
        b = jax.random.normal(kb_, (cout,), jnp.float32) * 0.05
        conv.append((w, b))
    kfw, kfb = jax.random.split(keys[3])
    scale = 1.0 / jnp.sqrt(fc_in)
    w_fc = jax.random.normal(kfw, (fc_in, 2 * latent_dim), jnp.float32) * scale
    b_fc = jax.random.normal(kfb, (2 * latent_dim,), jnp.float32) * scale
    return {"conv": conv, "w_fc": w_fc, "b_fc": b_fc, "latent_dim": latent_dim}


# Pure-JAX fp32 reference (NCHW conv, valid padding, stride 2, ReLU, flatten, fc, split)
def reference(x, params):
    h = x
    for (w, b) in params["conv"]:
        y = lax.conv_general_dilated(h, w, (2, 2), [(0, 0), (0, 0)],
                                     dimension_numbers=("NCHW", "HWIO", "NCHW"))
        h = jnp.maximum(y + b.reshape(1, -1, 1, 1), 0.0)
    enc = jnp.maximum(h.reshape(h.shape[0], -1), 0.0)
    out = enc @ params["w_fc"] + params["b_fc"]
    L = params["latent_dim"]
    return out[:, :L], out[:, L:]


if __name__ == "__main__":
    key = jax.random.PRNGKey(0)
    k_x, k_p = jax.random.split(key)

    # Scaled-down config consistent with the module: the module uses shape=32
    # (256x256 inputs -> 31x31 after three valid stride-2 convs, fc_in=64*31^2).
    # Here shape=4 -> 32x32 inputs -> 3x3, fc_in = 64*(4-1)^2, latent_dim=32.
    input_channels = 3
    latent_dim = 32
    shape = 4
    N = 2
    H = W = 8 * shape
    fc_in = 64 * (shape - 1) ** 2

    x = jax.random.normal(k_x, (N, input_channels, H, W), jnp.float32)   # NCHW, like PyTorch
    params = init_params(k_p, input_channels, latent_dim, fc_in)
    prep = prepare_params(params)            # weight repack/cast/pad done ONCE (hoisted)

    fwd = jax.jit(lambda xx: encoder_forward(xx, prep))
    mean, logvar = jax.block_until_ready(fwd(x))

    assert mean.shape == (N, latent_dim) and logvar.shape == (N, latent_dim)
    assert bool(jnp.isfinite(mean).all()) and bool(jnp.isfinite(logvar).all())

    ref_mean, ref_logvar = reference(x, params)
    assert jnp.allclose(mean, ref_mean, rtol=5e-2, atol=5e-2), "mean mismatch"
    assert jnp.allclose(logvar, ref_logvar, rtol=5e-2, atol=5e-2), "logvar mismatch"

    print("KERNEL_OK")
</pallas_src>

<mosaic_0001>
module attributes {stable_mosaic.version = 11 : i64} {
  func.func @_conv_relu_kernel(%arg0: i32, %arg1: i32, %arg2: memref<1x27x256xbf16, #tpu.memory_space<vmem>>, %arg3: memref<16x27xbf16, #tpu.memory_space<vmem>>, %arg4: memref<16x1xf32, #tpu.memory_space<vmem>>, %arg5: memref<1x16x256xbf16, #tpu.memory_space<vmem>>) attributes {dimension_semantics = [#tpu.dimension_semantics<parallel>, #tpu.dimension_semantics<parallel>], iteration_bounds = array<i64: 2, 1>, scalar_prefetch = 0 : i64, scratch_operands = 0 : i64, tpu.core_type = #tpu.core_type<tc>, window_params = [{transform_indices = @transform_0, window_bounds = array<i64: 1, 27, 256>}, {pipeline_mode = #tpu.pipeline_mode<synchronous>, transform_indices = @transform_1, window_bounds = array<i64: 16, 27>}, {pipeline_mode = #tpu.pipeline_mode<synchronous>, transform_indices = @transform_2, window_bounds = array<i64: 16, 1>}, {transform_indices = @transform_3, window_bounds = array<i64: 1, 16, 256>}]} {
    %c0 = arith.constant 0 : index
    %c0_0 = arith.constant 0 : index
    %0 = vector.load %arg3[%c0, %c0_0] : memref<16x27xbf16, #tpu.memory_space<vmem>>, vector<16x27xbf16>
    %c0_1 = arith.constant 0 : index
    %c0_2 = arith.constant 0 : index
    %c0_3 = arith.constant 0 : index
    %1 = vector.load %arg2[%c0_1, %c0_2, %c0_3] : memref<1x27x256xbf16, #tpu.memory_space<vmem>>, vector<1x27x256xbf16>
    %2 = vector.shape_cast %1 : vector<1x27x256xbf16> to vector<27x256xbf16>
    %cst = arith.constant dense<0.000000e+00> : vector<16x256xf32>
    %3 = tpu.matmul %0, %2, %cst {dimension_numbers = #tpu.dot_dimension_numbers<[1], [0], [0], [1], [0, 0, 1, 1], [], []>} : vector<16x27xbf16>, vector<27x256xbf16>, vector<16x256xf32> -> vector<16x256xf32>
    %c0_4 = arith.constant 0 : index
    %c0_5 = arith.constant 0 : index
    %4 = vector.load %arg4[%c0_4, %c0_5] : memref<16x1xf32, #tpu.memory_space<vmem>>, vector<16x1xf32>
    %5 = vector.broadcast %4 : vector<16x1xf32> to vector<16x256xf32>
    %6 = arith.addf %3, %5 : vector<16x256xf32>
    %cst_6 = arith.constant 0.000000e+00 : f32
    %7 = vector.broadcast %cst_6 : f32 to vector<16x256xf32>
    %8 = arith.maximumf %6, %7 : vector<16x256xf32>
    %9 = arith.truncf %8 : vector<16x256xf32> to vector<16x256xbf16>
    %c0_7 = arith.constant 0 : index
    %c0_8 = arith.constant 0 : index
    %c0_9 = arith.constant 0 : index
    %10 = vector.load %arg5[%c0_7, %c0_8, %c0_9] : memref<1x16x256xbf16, #tpu.memory_space<vmem>>, vector<1x16x256xbf16>
    %11 = vector.shape_cast %10 : vector<1x16x256xbf16> to vector<16x256xbf16>
    %12 = vector.shape_cast %9 : vector<16x256xbf16> to vector<1x16x256xbf16>
    tpu.vector_store %arg5[%c0_7, %c0_8, %c0_9], %12 {strides = array<i32>} : memref<1x16x256xbf16, #tpu.memory_space<vmem>>, vector<1x16x256xbf16>,
    return
  }
  func.func @transform_0(%arg0: i32, %arg1: i32) -> (i32, i32, i32) {
    %c0_i32 = arith.constant 0 : i32
    %c0_i32_0 = arith.constant 0 : i32
    return %arg0, %c0_i32, %arg1 : i32, i32, i32
  }
  func.func @transform_1(%arg0: i32, %arg1: i32) -> (i32, i32) {
    %c0_i32 = arith.constant 0 : i32
    %c0_i32_0 = arith.constant 0 : i32
    %c0_i32_1 = arith.constant 0 : i32
    return %c0_i32, %c0_i32_0 : i32, i32
  }
  func.func @transform_2(%arg0: i32, %arg1: i32) -> (i32, i32) {
    %c0_i32 = arith.constant 0 : i32
    %c0_i32_0 = arith.constant 0 : i32
    %c0_i32_1 = arith.constant 0 : i32
    return %c0_i32, %c0_i32_0 : i32, i32
  }
  func.func @transform_3(%arg0: i32, %arg1: i32) -> (i32, i32, i32) {
    %c0_i32 = arith.constant 0 : i32
    %c0_i32_0 = arith.constant 0 : i32
    return %arg0, %c0_i32, %arg1 : i32, i32, i32
  }
}

module attributes {stable_mosaic.version = 11 : i64} {
  func.func @_conv_relu_kernel(%arg0: i32, %arg1: i32, %arg2: memref<1x144x128xbf16, #tpu.memory_space<vmem>>, %arg3: memref<32x144xbf16, #tpu.memory_space<vmem>>, %arg4: memref<32x1xf32, #tpu.memory_space<vmem>>, %arg5: memref<1x32x128xbf16, #tpu.memory_space<vmem>>) attributes {dimension_semantics = [#tpu.dimension_semantics<parallel>, #tpu.dimension_semantics<parallel>], iteration_bounds = array<i64: 2, 1>, scalar_prefetch = 0 : i64, scratch_operands = 0 : i64, tpu.core_type = #tpu.core_type<tc>, window_params = [{transform_indices = @transform_0, window_bounds = array<i64: 1, 144, 128>}, {pipeline_mode = #tpu.pipeline_mode<synchronous>, transform_indices = @transform_1, window_bounds = array<i64: 32, 144>}, {pipeline_mode = #tpu.pipeline_mode<synchronous>, transform_indices = @transform_2, window_bounds = array<i64: 32, 1>}, {transform_indices = @transform_3, window_bounds = array<i64: 1, 32, 128>}]} {
    %c0 = arith.constant 0 : index
    %c0_0 = arith.constant 0 : index
    %0 = vector.load %arg3[%c0, %c0_0] : memref<32x144xbf16, #tpu.memory_space<vmem>>, vector<32x144xbf16>
    %c0_1 = arith.constant 0 : index
    %c0_2 = arith.constant 0 : index
    %c0_3 = arith.constant 0 : index
    %1 = vector.load %arg2[%c0_1, %c0_2, %c0_3] : memref<1x144x128xbf16, #tpu.memory_space<vmem>>, vector<1x144x128xbf16>
    %2 = vector.shape_cast %1 : vector<1x144x128xbf16> to vector<144x128xbf16>
    %cst = arith.constant dense<0.000000e+00> : vector<32x128xf32>
    %3 = tpu.matmul %0, %2, %cst {dimension_numbers = #tpu.dot_dimension_numbers<[1], [0], [0], [1], [0, 0, 1, 1], [], []>} : vector<32x144xbf16>, vector<144x128xbf16>, vector<32x128xf32> -> vector<32x128xf32>
    %c0_4 = arith.constant 0 : index
    %c0_5 = arith.constant 0 : index
    %4 = vector.load %arg4[%c0_4, %c0_5] : memref<32x1xf32, #tpu.memory_space<vmem>>, vector<32x1xf32>
    %5 = vector.broadcast %4 : vector<32x1xf32> to vector<32x128xf32>
    %6 = arith.addf %3, %5 : vector<32x128xf32>
    %cst_6 = arith.constant 0.000000e+00 : f32
    %7 = vector.broadcast %cst_6 : f32 to vector<32x128xf32>
    %8 = arith.maximumf %6, %7 : vector<32x128xf32>
    %9 = arith.truncf %8 : vector<32x128xf32> to vector<32x128xbf16>
    %c0_7 = arith.constant 0 : index
    %c0_8 = arith.constant 0 : index
    %c0_9 = arith.constant 0 : index
    %10 = vector.load %arg5[%c0_7, %c0_8, %c0_9] : memref<1x32x128xbf16, #tpu.memory_space<vmem>>, vector<1x32x128xbf16>
    %11 = vector.shape_cast %10 : vector<1x32x128xbf16> to vector<32x128xbf16>
    %12 = vector.shape_cast %9 : vector<32x128xbf16> to vector<1x32x128xbf16>
    tpu.vector_store %arg5[%c0_7, %c0_8, %c0_9], %12 {strides = array<i32>} : memref<1x32x128xbf16, #tpu.memory_space<vmem>>, vector<1x32x128xbf16>,
    return
  }
  func.func @transform_0(%arg0: i32, %arg1: i32) -> (i32, i32, i32) {
    %c0_i32 = arith.constant 0 : i32
    %c0_i32_0 = arith.constant 0 : i32
    return %arg0, %c0_i32, %arg1 : i32, i32, i32
  }
  func.func @transform_1(%arg0: i32, %arg1: i32) -> (i32, i32) {
    %c0_i32 = arith.constant 0 : i32
    %c0_i32_0 = arith.constant 0 : i32
    %c0_i32_1 = arith.constant 0 : i32
    return %c0_i32, %c0_i32_0 : i32, i32
  }
  func.func @transform_2(%arg0: i32, %arg1: i32) -> (i32, i32) {
    %c0_i32 = arith.constant 0 : i32
    %c0_i32_0 = arith.constant 0 : i32
    %c0_i32_1 = arith.constant 0 : i32
    return %c0_i32, %c0_i32_0 : i32, i32
  }
  func.func @transform_3(%arg0: i32, %arg1: i32) -> (i32, i32, i32) {
    %c0_i32 = arith.constant 0 : i32
    %c0_i32_0 = arith.constant 0 : i32
    return %arg0, %c0_i32, %arg1 : i32, i32, i32
  }
}

module attributes {stable_mosaic.version = 11 : i64} {
  func.func @_conv_relu_kernel(%arg0: i32, %arg1: i32, %arg2: memref<1x288x128xbf16, #tpu.memory_space<vmem>>, %arg3: memref<64x288xbf16, #tpu.memory_space<vmem>>, %arg4: memref<64x1xf32, #tpu.memory_space<vmem>>, %arg5: memref<1x64x128xbf16, #tpu.memory_space<vmem>>) attributes {dimension_semantics = [#tpu.dimension_semantics<parallel>, #tpu.dimension_semantics<parallel>], iteration_bounds = array<i64: 2, 1>, scalar_prefetch = 0 : i64, scratch_operands = 0 : i64, tpu.core_type = #tpu.core_type<tc>, window_params = [{transform_indices = @transform_0, window_bounds = array<i64: 1, 288, 128>}, {pipeline_mode = #tpu.pipeline_mode<synchronous>, transform_indices = @transform_1, window_bounds = array<i64: 64, 288>}, {pipeline_mode = #tpu.pipeline_mode<synchronous>, transform_indices = @transform_2, window_bounds = array<i64: 64, 1>}, {transform_indices = @transform_3, window_bounds = array<i64: 1, 64, 128>}]} {
    %c0 = arith.constant 0 : index
    %c0_0 = arith.constant 0 : index
    %0 = vector.load %arg3[%c0, %c0_0] : memref<64x288xbf16, #tpu.memory_space<vmem>>, vector<64x288xbf16>
    %c0_1 = arith.constant 0 : index
    %c0_2 = arith.constant 0 : index
    %c0_3 = arith.constant 0 : index
    %1 = vector.load %arg2[%c0_1, %c0_2, %c0_3] : memref<1x288x128xbf16, #tpu.memory_space<vmem>>, vector<1x288x128xbf16>
    %2 = vector.shape_cast %1 : vector<1x288x128xbf16> to vector<288x128xbf16>
    %cst = arith.constant dense<0.000000e+00> : vector<64x128xf32>
    %3 = tpu.matmul %0, %2, %cst {dimension_numbers = #tpu.dot_dimension_numbers<[1], [0], [0], [1], [0, 0, 1, 1], [], []>} : vector<64x288xbf16>, vector<288x128xbf16>, vector<64x128xf32> -> vector<64x128xf32>
    %c0_4 = arith.constant 0 : index
    %c0_5 = arith.constant 0 : index
    %4 = vector.load %arg4[%c0_4, %c0_5] : memref<64x1xf32, #tpu.memory_space<vmem>>, vector<64x1xf32>
    %5 = vector.broadcast %4 : vector<64x1xf32> to vector<64x128xf32>
    %6 = arith.addf %3, %5 : vector<64x128xf32>
    %cst_6 = arith.constant 0.000000e+00 : f32
    %7 = vector.broadcast %cst_6 : f32 to vector<64x128xf32>
    %8 = arith.maximumf %6, %7 : vector<64x128xf32>
    %9 = arith.truncf %8 : vector<64x128xf32> to vector<64x128xbf16>
    %c0_7 = arith.constant 0 : index
    %c0_8 = arith.constant 0 : index
    %c0_9 = arith.constant 0 : index
    %10 = vector.load %arg5[%c0_7, %c0_8, %c0_9] : memref<1x64x128xbf16, #tpu.memory_space<vmem>>, vector<1x64x128xbf16>
    %11 = vector.shape_cast %10 : vector<1x64x128xbf16> to vector<64x128xbf16>
    %12 = vector.shape_cast %9 : vector<64x128xbf16> to vector<1x64x128xbf16>
    tpu.vector_store %arg5[%c0_7, %c0_8, %c0_9], %12 {strides = array<i32>} : memref<1x64x128xbf16, #tpu.memory_space<vmem>>, vector<1x64x128xbf16>,
    return
  }
  func.func @transform_0(%arg0: i32, %arg1: i32) -> (i32, i32, i32) {
    %c0_i32 = arith.constant 0 : i32
    %c0_i32_0 = arith.constant 0 : i32
    return %arg0, %c0_i32, %arg1 : i32, i32, i32
  }
  func.func @transform_1(%arg0: i32, %arg1: i32) -> (i32, i32) {
    %c0_i32 = arith.constant 0 : i32
    %c0_i32_0 = arith.constant 0 : i32
    %c0_i32_1 = arith.constant 0 : i32
    return %c0_i32, %c0_i32_0 : i32, i32
  }
  func.func @transform_2(%arg0: i32, %arg1: i32) -> (i32, i32) {
    %c0_i32 = arith.constant 0 : i32
    %c0_i32_0 = arith.constant 0 : i32
    %c0_i32_1 = arith.constant 0 : i32
    return %c0_i32, %c0_i32_0 : i32, i32
  }
  func.func @transform_3(%arg0: i32, %arg1: i32) -> (i32, i32, i32) {
    %c0_i32 = arith.constant 0 : i32
    %c0_i32_0 = arith.constant 0 : i32
    return %arg0, %c0_i32, %arg1 : i32, i32, i32
  }
}

module attributes {stable_mosaic.version = 11 : i64} {
  func.func @_fc_kernel(%arg0: i32, %arg1: memref<2x640xbf16, #tpu.memory_space<vmem>>, %arg2: memref<640x64xbf16, #tpu.memory_space<vmem>>, %arg3: memref<1x64xf32, #tpu.memory_space<vmem>>, %arg4: memref<2x64xf32, #tpu.memory_space<vmem>>, %arg5: memref<2x64xf32, #tpu.memory_space<vmem>>) attributes {dimension_semantics = [#tpu.dimension_semantics<arbitrary>], iteration_bounds = array<i64: 1>, scalar_prefetch = 0 : i64, scratch_operands = 1 : i64, tpu.core_type = #tpu.core_type<tc>, window_params = [{transform_indices = @transform_0, window_bounds = array<i64: 2, 640>}, {transform_indices = @transform_1, window_bounds = array<i64: 640, 64>}, {pipeline_mode = #tpu.pipeline_mode<synchronous>, transform_indices = @transform_2, window_bounds = array<i64: 1, 64>}, {pipeline_mode = #tpu.pipeline_mode<synchronous>, transform_indices = @transform_3, window_bounds = array<i64: 2, 64>}]} {
    %c0_i32 = arith.constant 0 : i32
    %0 = arith.cmpi eq, %arg0, %c0_i32 : i32
    %1 = arith.extui %0 : i1 to i32
    %c0_i32_0 = arith.constant 0 : i32
    %2 = arith.cmpi ne, %1, %c0_i32_0 : i32
    scf.if %2 {
      %cst_10 = arith.constant 0.000000e+00 : f32
      %12 = vector.broadcast %cst_10 : f32 to vector<2x64xf32>
      %c0_11 = arith.constant 0 : index
      %c0_12 = arith.constant 0 : index
      %13 = vector.load %arg5[%c0_11, %c0_12] : memref<2x64xf32, #tpu.memory_space<vmem>>, vector<2x64xf32>
      tpu.vector_store %arg5[%c0_11, %c0_12], %12 {strides = array<i32>} : memref<2x64xf32, #tpu.memory_space<vmem>>, vector<2x64xf32>,
    } else {
    }
    %c0 = arith.constant 0 : index
    %c0_1 = arith.constant 0 : index
    %3 = vector.load %arg5[%c0, %c0_1] : memref<2x64xf32, #tpu.memory_space<vmem>>, vector<2x64xf32>
    %c0_2 = arith.constant 0 : index
    %c0_3 = arith.constant 0 : index
    %4 = vector.load %arg1[%c0_2, %c0_3] : memref<2x640xbf16, #tpu.memory_space<vmem>>, vector<2x640xbf16>
    %c0_4 = arith.constant 0 : index
    %c0_5 = arith.constant 0 : index
    %5 = vector.load %arg2[%c0_4, %c0_5] : memref<640x64xbf16, #tpu.memory_space<vmem>>, vector<640x64xbf16>
    %cst = arith.constant dense<0.000000e+00> : vector<2x64xf32>
    %6 = tpu.matmul %4, %5, %cst {dimension_numbers = #tpu.dot_dimension_numbers<[1], [0], [0], [1], [0, 0, 1, 1], [], []>} : vector<2x640xbf16>, vector<640x64xbf16>, vector<2x64xf32> -> vector<2x64xf32>
    %7 = arith.addf %3, %6 : vector<2x64xf32>
    %c0_6 = arith.constant 0 : index
    %c0_7 = arith.constant 0 : index
    %8 = vector.load %arg5[%c0_6, %c0_7] : memref<2x64xf32, #tpu.memory_space<vmem>>, vector<2x64xf32>
    tpu.vector_store %arg5[%c0_6, %c0_7], %7 {strides = array<i32>} : memref<2x64xf32, #tpu.memory_space<vmem>>, vector<2x64xf32>,
    %c0_i32_8 = arith.constant 0 : i32
    %9 = arith.cmpi eq, %arg0, %c0_i32_8 : i32
    %10 = arith.extui %9 : i1 to i32
    %c0_i32_9 = arith.constant 0 : i32
    %11 = arith.cmpi ne, %10, %c0_i32_9 : i32
    scf.if %11 {
      %c0_10 = arith.constant 0 : index
      %c0_11 = arith.constant 0 : index
      %12 = vector.load %arg5[%c0_10, %c0_11] : memref<2x64xf32, #tpu.memory_space<vmem>>, vector<2x64xf32>
      %c0_12 = arith.constant 0 : index
      %c0_13 = arith.constant 0 : index
      %13 = vector.load %arg3[%c0_12, %c0_13] : memref<1x64xf32, #tpu.memory_space<vmem>>, vector<1x64xf32>
      %14 = vector.broadcast %13 : vector<1x64xf32> to vector<2x64xf32>
      %15 = arith.addf %12, %14 : vector<2x64xf32>
      %c0_14 = arith.constant 0 : index
      %c0_15 = arith.constant 0 : index
      %16 = vector.load %arg4[%c0_14, %c0_15] : memref<2x64xf32, #tpu.memory_space<vmem>>, vector<2x64xf32>
      tpu.vector_store %arg4[%c0_14, %c0_15], %15 {strides = array<i32>} : memref<2x64xf32, #tpu.memory_space<vmem>>, vector<2x64xf32>,
    } else {
    }
    return
  }
  func.func @transform_0(%arg0: i32) -> (i32, i32) {
    %c0_i32 = arith.constant 0 : i32
    %c0_i32_0 = arith.constant 0 : i32
    return %c0_i32, %arg0 : i32, i32
  }
  func.func @transform_1(%arg0: i32) -> (i32, i32) {
    %c0_i32 = arith.constant 0 : i32
    %c0_i32_0 = arith.constant 0 : i32
    return %arg0, %c0_i32 : i32, i32
  }
  func.func @transform_2(%arg0: i32) -> (i32, i32) {
    %c0_i32 = arith.constant 0 : i32
    %c0_i32_0 = arith.constant 0 : i32
    %c0_i32_1 = arith.constant 0 : i32
    return %c0_i32, %c0_i32_0 : i32, i32
  }
  func.func @transform_3(%arg0: i32) -> (i32, i32) {
    %c0_i32 = arith.constant 0 : i32
    %c0_i32_0 = arith.constant 0 : i32
    %c0_i32_1 = arith.constant 0 : i32
    return %c0_i32, %c0_i32_0 : i32, i32
  }
}

</mosaic_0001>

<bundles_post_ra>
// kernel: _lambda_.4
= control target key start
LH: loop header
LB: loop body
LE: loop exit
PB: predicated region body
PF: predicated region fallthrough
CT: control target
= control target key end

     0   :  { %s517_s12 = smov 0   ;;  %s519_s13 = smov 0   ;;  %s563_s0 = inlined_call_operand.vmem [shape: bf16[2,27,256], index: 0, kind: input, shape index: {}]   ;;  %s564_s1 = inlined_call_operand.vmem [shape: bf16[16,27], index: 1, kind: input, shape index: {}]   ;;  %s565_s2 = inlined_call_operand.vmem [shape: f32[16,1], index: 2, kind: input, shape index: {}]   ;;  %s566_s3 = inlined_call_operand.vmem [shape: bf16[2,16,256], index: 3, kind: output, shape index: {}]  }
   0x1   :  { %s521_s14 = smov 0  }
   0x2 LB: > { %s25_s15 = sadd.s32 1, %s489_s13  ;;  %p418_p0 = scmp.ge.s32.totalorder %s493_s14, 1  ;;  %s493_s14 = sphi %s521_s14, %s13_s14   ;;  %s489_s13 = sphi %s519_s13, %s568_s13   ;;  %s485_s12 = sphi %s517_s12, %s567_s12  }
   0x3   : > { %p27_p1 = scmp.ge.s32.totalorder %s25_s15, 2  ;;  %p158_p2 = scmp.lt.s32.totalorder %s493_s14, 3 }
   0x5   : > { %s570_s15 = smov (%p27_p1, %s25_s15), 0  ;;  %p159_p3 = pnand %p418_p0, %p158_p2 }
   0x6   : > { %p191_p4 = scmp.lt.s32.totalorder (!%p159_p3), %s485_s12, 1  ;;  %vm256_vm0 = vcmask (!%p159_p3), 1044480   ;;  %v495_v0 = vmov (!%p159_p3), 0   ;;  %v217_v1 = vld [vmem:[%s565_s2] sm:$0xff] (!%p159_p3)  ;;  %vm257_vm1 = vcmask (!%p159_p3), 1045504   ;;  %v496_v2 = vmov (!%p159_p3), 65535  }
   0x7   : > { %162 = sbr.rel (%p159_p3) target bundleno = 248 (0xf8), region = 32  ;;  %298 = vmatprep.mubr.bf16.mxu0 (!%p159_p3), %v495_v0  ;;  %463 = vset.pattern.permute.xlu0 (!%p159_p3), %v495_v0  ;;  %v258_v3 = vsel (!%p159_p3), %vm256_vm0, 4294967295, %v496_v2  ;;  %v218_v4 = vld [vmem:[%s565_s2 + $0x8] sm:$0xff] (!%p159_p3)  ;;  %v470_v12 = vld [vmem:[%s564_s1] sm:$0xff] (!%p159_p3)   ;;  %vm252_vm2 = vcmask (!%p159_p3), 220160  }
   0x8   : > { %221 = vperm.xlu0 (!%p159_p3), %463, %v217_v1   ;;  %v259_v7 = vsel (!%p159_p3), %vm257_vm1, %v258_v3, 0 }
   0xc   : > { %226 = vperm.xlu0 (!%p159_p3), %463, %v218_v4  }
   0xe   : > { %s572_s12 = smov (!%p191_p4, %s485_s12), 1 }
   0xf   : > { %s433_s18 = sshll.u32 %s572_s12, 5  ;;  %s434_s26 = sshll.u32 %s572_s12, 4 }
  0x10   : > { %s198_s23 = scalar_lea.vmem %s563_s0, %s433_s18  ;;  %s208_s29 = scalar_lea.vmem %s566_s3, %s434_s26 }
  0x11   : > { %v464_v5 = vld [vmem:[%s198_s23 + $0x4] ss:$8 sps:$4 sm:$0xff]   ;;  %v466_v6 = vld [vmem:[%s198_s23] ss:$8 sps:$4 sm:$0xff]  }
  0x12   : > { %266 = vmatprep.subr.bf16.mxu0 %v464_v5  ;;  %v467_v8 = vld [vmem:[%s198_s23 + $0x14] ss:$8 sps:$4 sm:$0x3f]   ;;  %v469_v9 = vld [vmem:[%s198_s23 + $0x10] ss:$8 sps:$4 sm:$0x3f]  }
  0x13   : > { %267 = vmatpush1.bf16.msra.mxu0 %v466_v6  ;;  %v264_v10 = vand.u32 %v467_v8, %v259_v7  ;;  %v261_v11 = vand.u32 %v469_v9, %v259_v7 }
  0x15   : > { %268 = vmatprep.subr.bf16.mxu0 %v264_v10 }
  0x17   : > { %269 = vmatpush1.bf16.msra.mxu0 %v261_v11 }
  0x1a   : > { %428 = vmatmul.mubr.msk.bf16.vlgmr.msra.gmra.mrb[0].mxu0 %vm252_vm2, %v470_v12 }
  0x87   : > { %v222_v13 = vpop.permute.xlu0 %221 }
  0x8b   : > { %v227_v17 = vpop.permute.xlu0 %226 }
  0xed   : > { %v300_v14 = vpop.f32.mrb[0].mxu0 }
  0xee   : > { %v301_v15 = vadd.f32 %v300_v14, %v222_v13  ;;  %v302_v16 = vpop.f32.mrb[1].mxu0 }
  0xef   : > { %v303_v18 = vadd.f32 %v302_v16, %v222_v13  ;;  %v304_v19 = vpop.f32.mrb[2].mxu0 }
  0xf0   : > { %v309_v20 = vmax.f32 %v301_v15, 0.0  ;;  %v305_v21 = vadd.f32 %v304_v19, %v227_v17  ;;  %v306_v22 = vpop.f32.mrb[3].mxu0 }
  0xf1   : > { %v310_v23 = vmax.f32 %v303_v18, 0.0  ;;  %v307_v24 = vadd.f32 %v306_v22, %v227_v17 }
  0xf2   : > { %v311_v25 = vmax.f32 %v305_v21, 0.0 }
  0xf3   : > { %v435_v26 = vpack.c.bf16 %v310_v23, %v309_v20  ;;  %v312_v27 = vmax.f32 %v307_v24, 0.0 }
  0xf5   : > { %325 = vst [vmem:[%s208_s29] sm:$0xff] %v435_v26  ;;  %v436_v28 = vpack.c.bf16 %v312_v27, %v311_v25 }
  0xf7   : > { %326 = vst [vmem:[%s208_s29 + $0x8] sm:$0xff] %v436_v28 }
  0xf8 PF: > { %s13_s14 = sadd.s32 1, %s493_s14   ;;  %s567_s12 = smov %s489_s13 }
  0xf9   : > { %p10_p5 = scmp.ge.s32.totalorder %s13_s14, 4   ;;  %s568_s13 = smov %s570_s15 }
  0xfb   :  { %12 = sbr.rel (!%p10_p5) target bundleno = 2 (0x2), region = 62 }

// kernel: _lambda_.5
= control target key start
LH: loop header
LB: loop body
LE: loop exit
PB: predicated region body
PF: predicated region fallthrough
CT: control target
= control target key end

     0   :  { %s635_s12 = smov 0   ;;  %s637_s13 = smov 0   ;;  %s707_s0 = inlined_call_operand.vmem [shape: bf16[2,144,128], index: 0, kind: input, shape index: {}]   ;;  %s708_s1 = inlined_call_operand.vmem [shape: bf16[32,144], index: 1, kind: input, shape index: {}]   ;;  %s709_s2 = inlined_call_operand.vmem [shape: f32[32,1], index: 2, kind: input, shape index: {}]   ;;  %s710_s3 = inlined_call_operand.vmem [shape: bf16[2,32,128], index: 3, kind: output, shape index: {}]  }
   0x1   :  { %s639_s14 = smov 0  }
   0x2 LB: > { %s25_s15 = sadd.s32 1, %s608_s13  ;;  %p488_p0 = scmp.ge.s32.totalorder %s612_s14, 1  ;;  %s612_s14 = sphi %s639_s14, %s13_s14   ;;  %s608_s13 = sphi %s637_s13, %s712_s13   ;;  %s604_s12 = sphi %s635_s12, %s711_s12  }
   0x3   : > { %p27_p1 = scmp.ge.s32.totalorder %s25_s15, 2  ;;  %p156_p2 = scmp.lt.s32.totalorder %s612_s14, 3 }
   0x5   : > { %s714_s15 = smov (%p27_p1, %s25_s15), 0  ;;  %p157_p3 = pnand %p488_p0, %p156_p2 }
   0x6   : > { %p186_p4 = scmp.lt.s32.totalorder (!%p157_p3), %s604_s12, 1  ;;  %v614_v0 = vmov (!%p157_p3), 0   ;;  %v586_v1 = vld [vmem:[%s708_s1 + $0x4] ss:$8 sps:$4 sm:$0xff] (!%p157_p3)   ;;  %vm321_vm0 = vcmask (!%p157_p3), 130048   ;;  %v227_v3 = vld [vmem:[%s709_s2 + $0x10] sm:$0xff] (!%p157_p3) }
   0x7   : > { %160 = sbr.rel (%p157_p3) target bundleno = 275 (0x113), region = 32  ;;  %328 = vmatprep.subr.bf16.mxu0 (!%p157_p3), %v614_v0  ;;  %529 = vmatprep.subr.bf16.mxu1 (!%p157_p3), %v614_v0  ;;  %v589_v2 = vld [vmem:[%s708_s1 + $0x14] ss:$8 sps:$4 sm:$0xff] (!%p157_p3)   ;;  %v225_v4 = vld [vmem:[%s709_s2] sm:$0xff] (!%p157_p3)  ;;  %v226_v6 = vld [vmem:[%s709_s2 + $0x8] sm:$0xff] (!%p157_p3) }
   0x8   : > { %574 = vset.pattern.permute.xlu1 (!%p157_p3), %v614_v0  ;;  %573 = vset.pattern.permute.xlu0 (!%p157_p3), %v614_v0  ;;  %v228_v5 = vld [vmem:[%s709_s2 + $0x18] sm:$0xff] (!%p157_p3)  ;;  %v584_v16 = vld [vmem:[%s708_s1] ss:$8 sps:$4 sm:$0xff] (!%p157_p3)  }
   0x9   : > { %505 = vmatprep.mubr.msk.bf16.mxu0 (!%p157_p3), %vm321_vm0, %v586_v1  ;;  %241 = vperm.xlu1 (!%p157_p3), %574, %v227_v3   ;;  %v587_v17 = vld [vmem:[%s708_s1 + $0x10] ss:$8 sps:$4 sm:$0xff] (!%p157_p3)  }
   0xa   : > { %506 = vmatprep.mubr.msk.bf16.mxu1 (!%p157_p3), %vm321_vm0, %v589_v2  ;;  %231 = vperm.xlu0 (!%p157_p3), %573, %v225_v4  }
   0xd   : > { %246 = vperm.xlu1 (!%p157_p3), %574, %v228_v5  }
   0xe   : > { %s716_s12 = smov (!%p186_p4, %s604_s12), 1  ;;  %236 = vperm.xlu0 %573, %v226_v6  }
   0xf   : > { %s547_s24 = smul.u32 72, %s716_s12  ;;  %s513_s9 = sshll.u32 %s716_s12, 4 }
  0x10   : > { %s201_s16 = scalar_lea.vmem %s710_s3, %s513_s9 }
  0x11   : > { %s677_s4 = scalar_lea.vmem %s707_s0, %s547_s24 }
  0x12   : > { %v575_v7 = vld [vmem:[%s677_s4] sm:$0xff]   ;;  %v576_v8 = vld [vmem:[%s677_s4 + $0x8] sm:$0xff]   ;;  %v577_v9 = vld [vmem:[%s677_s4 + $0x10] sm:$0xff]  }
  0x13   : > { %329 = vmatpush1.bf16.msra.mxu0 %v575_v7  ;;  %538 = vmatpush1.bf16.msra.mxu1 %v575_v7  ;;  %v578_v10 = vld [vmem:[%s677_s4 + $0x18] sm:$0xff]   ;;  %v579_v11 = vld [vmem:[%s677_s4 + $0x20] sm:$0xff]   ;;  %v580_v12 = vld [vmem:[%s677_s4 + $0x28] sm:$0xff]  }
  0x14   : > { %330 = vmatprep.subr.bf16.mxu0 %v614_v0  ;;  %530 = vmatprep.subr.bf16.mxu1 %v614_v0  ;;  %v581_v13 = vld [vmem:[%s677_s4 + $0x30] sm:$0xff]   ;;  %v582_v14 = vld [vmem:[%s677_s4 + $0x38] sm:$0xff]   ;;  %v583_v15 = vld [vmem:[%s677_s4 + $0x40] sm:$0xff]  }
  0x17   : > { %331 = vmatpush1.bf16.msra.mxu0 %v576_v8  ;;  %539 = vmatpush1.bf16.msra.mxu1 %v576_v8 }
  0x18   : > { %332 = vmatprep.subr.bf16.mxu0 %v614_v0  ;;  %531 = vmatprep.subr.bf16.mxu1 %v614_v0 }
  0x1b   : > { %333 = vmatpush1.bf16.msra.mxu0 %v577_v9  ;;  %540 = vmatpush1.bf16.msra.mxu1 %v577_v9 }
  0x1c   : > { %334 = vmatprep.subr.bf16.mxu0 %v614_v0  ;;  %532 = vmatprep.subr.bf16.mxu1 %v614_v0 }
  0x1f   : > { %335 = vmatpush1.bf16.msra.mxu0 %v578_v10  ;;  %541 = vmatpush1.bf16.msra.mxu1 %v578_v10 }
  0x20   : > { %336 = vmatprep.subr.bf16.mxu0 %v614_v0  ;;  %533 = vmatprep.subr.bf16.mxu1 %v614_v0 }
  0x23   : > { %337 = vmatpush1.bf16.msra.mxu0 %v579_v11  ;;  %542 = vmatpush1.bf16.msra.mxu1 %v579_v11 }
  0x24   : > { %338 = vmatprep.subr.bf16.mxu0 %v614_v0  ;;  %534 = vmatprep.subr.bf16.mxu1 %v614_v0 }
  0x27   : > { %339 = vmatpush1.bf16.msra.mxu0 %v580_v12  ;;  %543 = vmatpush1.bf16.msra.mxu1 %v580_v12 }
  0x28   : > { %340 = vmatprep.subr.bf16.mxu0 %v614_v0  ;;  %535 = vmatprep.subr.bf16.mxu1 %v614_v0 }
  0x2b   : > { %341 = vmatpush1.bf16.msra.mxu0 %v581_v13  ;;  %544 = vmatpush1.bf16.msra.mxu1 %v581_v13 }
  0x2c   : > { %342 = vmatprep.subr.bf16.mxu0 %v614_v0  ;;  %536 = vmatprep.subr.bf16.mxu1 %v614_v0 }
  0x2f   : > { %343 = vmatpush1.bf16.msra.mxu0 %v582_v14  ;;  %545 = vmatpush1.bf16.msra.mxu1 %v582_v14 }
  0x30   : > { %344 = vmatprep.subr.bf16.mxu0 %v614_v0  ;;  %537 = vmatprep.subr.bf16.mxu1 %v614_v0 }
  0x33   : > { %345 = vmatpush1.bf16.msra.mxu0 %v583_v15  ;;  %546 = vmatpush1.bf16.msra.mxu1 %v583_v15 }
  0x36   : > { %361 = vmatmul.mubr.bf16.vlgmr.msra.gmra.mrb[0].mxu0 %v584_v16  ;;  %369 = vmatmul.mubr.bf16.vlgmr.msra.gmra.mrb[0].mxu1 %v587_v17 }
  0x88   : > { %v242_v18 = vpop.permute.xlu1 %241 }
  0x89   : > { %v232_v19 = vpop.permute.xlu0 %231 }
  0x8c   : > { %v247_v20 = vpop.permute.xlu1 %246 }
  0x8d   : > { %v237_v21 = vpop.permute.xlu0 %236 }
 0x109   : > { %v362_v22 = vpop.f32.mrb[0].mxu0  ;;  %v370_v23 = vpop.f32.mrb[0].mxu1 }
 0x10a   : > { %v363_v24 = vadd.f32 %v362_v22, %v232_v19  ;;  %v371_v25 = vadd.f32 %v370_v23, %v242_v18  ;;  %v364_v26 = vpop.f32.mrb[1].mxu0  ;;  %v372_v27 = vpop.f32.mrb[1].mxu1 }
 0x10b   : > { %v365_v28 = vpop.f32.mrb[2].mxu0  ;;  %v373_v29 = vpop.f32.mrb[2].mxu1 }
 0x10c   : > { %v366_v30 = vadd.f32 %v365_v28, %v237_v21  ;;  %v374_v31 = vadd.f32 %v373_v29, %v247_v20  ;;  %v367_v32 = vpop.f32.mrb[3].mxu0  ;;  %v375_v33 = vpop.f32.mrb[3].mxu1  ;;  %v377_v34 = vmax.f32 %v363_v24, 0.0  ;;  %v379_v35 = vmax.f32 %v371_v25, 0.0 }
 0x10e   : > { %v378_v36 = vmax.f32 %v366_v30, 0.0  ;;  %v380_v37 = vmax.f32 %v374_v31, 0.0 }
 0x110   : > { %v521_v38 = vpack.c.bf16 %v378_v36, %v377_v34  ;;  %v526_v39 = vpack.c.bf16 %v380_v37, %v379_v35 }
 0x112   : > { %522 = vst [vmem:[%s201_s16] sm:$0xff] %v521_v38   ;;  %528 = vst [vmem:[%s201_s16 + $0x8] sm:$0xff] %v526_v39  }
 0x113 PF: > { %s13_s14 = sadd.s32 1, %s612_s14   ;;  %s711_s12 = smov %s608_s13 }
 0x114   : > { %p10_p5 = scmp.ge.s32.totalorder %s13_s14, 4   ;;  %s712_s13 = smov %s714_s15 }
 0x116   :  { %12 = sbr.rel (!%p10_p5) target bundleno = 2 (0x2), region = 62 }

// kernel: _lambda_.6
= control target key start
LH: loop header
LB: loop body
LE: loop exit
PB: predicated region body
PF: predicated region fallthrough
CT: control target
= control target key end

     0   :  { %s1010_s12 = smov 0   ;;  %s1012_s13 = smov 0   ;;  %s1137_s0 = inlined_call_operand.vmem [shape: bf16[2,288,128], index: 0, kind: input, shape index: {}]   ;;  %s1138_s1 = inlined_call_operand.vmem [shape: bf16[64,288], index: 1, kind: input, shape index: {}]   ;;  %s1139_s2 = inlined_call_operand.vmem [shape: f32[64,1], index: 2, kind: input, shape index: {}]   ;;  %s1140_s3 = inlined_call_operand.vmem [shape: bf16[2,64,128], index: 3, kind: output, shape index: {}]  }
   0x1   :  { %s1014_s14 = smov 0  }
   0x2 LB: > { %s25_s15 = sadd.s32 1, %s983_s13  ;;  %p749_p0 = scmp.ge.s32.totalorder %s987_s14, 1  ;;  %s987_s14 = sphi %s1014_s14, %s13_s14   ;;  %s983_s13 = sphi %s1012_s13, %s1142_s13   ;;  %s979_s12 = sphi %s1010_s12, %s1141_s12  }
   0x3   : > { %p27_p1 = scmp.ge.s32.totalorder %s25_s15, 2  ;;  %p156_p2 = scmp.lt.s32.totalorder %s987_s14, 3 }
   0x5   : > { %s1144_s15 = smov (%p27_p1, %s25_s15), 0  ;;  %p157_p3 = pnand %p749_p0, %p156_p2 }
   0x6   : > { %p186_p4 = scmp.lt.s32.totalorder (!%p157_p3), %s979_s12, 1  ;;  %v949_v0 = vld [vmem:[%s1138_s1 + $0x4] ss:$12 sps:$4 sm:$0xff] (!%p157_p3)   ;;  %v952_v1 = vld [vmem:[%s1138_s1 + $0x4c] ss:$12 sps:$4 sm:$0xff] (!%p157_p3)   ;;  %v989_v2 = vmov (!%p157_p3), 0  }
   0x7   : > { %160 = sbr.rel (%p157_p3) target bundleno = 293 (0x125), region = 32  ;;  %930 = vset.pattern.permute.xlu1 (!%p157_p3), %v989_v2  ;;  %929 = vset.pattern.permute.xlu0 (!%p157_p3), %v989_v2  ;;  %v257_v16 = vld [vmem:[%s1139_s2 + $0x10] sm:$0xff] (!%p157_p3)  ;;  %v255_v17 = vld [vmem:[%s1139_s2] sm:$0xff] (!%p157_p3)  ;;  %v258_v18 = vld [vmem:[%s1139_s2 + $0x18] sm:$0xff] (!%p157_p3)  ;;  %vm471_vm0 = vcmask (!%p157_p3), 261120  }
   0x8   : > { %516 = vmatprep.mubr.bf16.mxu0 (!%p157_p3), %v949_v0  ;;  %540 = vmatprep.mubr.bf16.mxu1 (!%p157_p3), %v952_v1  ;;  %v256_v19 = vld [vmem:[%s1139_s2 + $0x8] sm:$0xff] (!%p157_p3)  ;;  %v259_v23 = vld [vmem:[%s1139_s2 + $0x20] sm:$0xff] (!%p157_p3)  ;;  %v262_v28 = vld [vmem:[%s1139_s2 + $0x38] sm:$0xff] (!%p157_p3) }
   0x9   : > { %275 = vperm.xlu1 (!%p157_p3), %930, %v257_v16   ;;  %265 = vperm.xlu0 (!%p157_p3), %929, %v255_v17   ;;  %v260_v22 = vld [vmem:[%s1139_s2 + $0x28] sm:$0xff] (!%p157_p3)  ;;  %v261_v29 = vld [vmem:[%s1139_s2 + $0x30] sm:$0xff] (!%p157_p3)  ;;  %v958_v33 = vld [vmem:[%s1138_s1 + $0x18] ss:$12 sps:$4 sm:$0xff] (!%p157_p3)  }
   0xa   : > { %v947_v26 = vld [vmem:[%s1138_s1] ss:$12 sps:$4 sm:$0xff] (!%p157_p3)   ;;  %v950_v27 = vld [vmem:[%s1138_s1 + $0x48] ss:$12 sps:$4 sm:$0xff] (!%p157_p3)   ;;  %v962_v36 = vld [vmem:[%s1138_s1 + $0x38] ss:$12 sps:$4 sm:$0xff] (!%p157_p3)  }
   0xb   : > { %v955_v30 = vld [vmem:[%s1138_s1 + $0x1c] ss:$12 sps:$4 sm:$0xff] (!%p157_p3)   ;;  %v959_v34 = vld [vmem:[%s1138_s1 + $0x20] ss:$12 sps:$4 sm:$0xff] (!%p157_p3)  }
   0xc   : > { %v957_v32 = vld [vmem:[%s1138_s1 + $0x8] ss:$12 sps:$4 sm:$0xff] (!%p157_p3)   ;;  %v963_v37 = vld [vmem:[%s1138_s1 + $0x30] ss:$12 sps:$4 sm:$0xff] (!%p157_p3)  }
   0xd   : > { %280 = vperm.xlu1 (!%p157_p3), %930, %v258_v18   ;;  %270 = vperm.xlu0 (!%p157_p3), %929, %v256_v19   ;;  %v960_v35 = vld [vmem:[%s1138_s1 + $0x34] ss:$12 sps:$4 sm:$0xff] (!%p157_p3)   ;;  %v964_v38 = vld [vmem:[%s1138_s1 + $0x50] ss:$12 sps:$4 sm:$0xff] (!%p157_p3)  }
   0xe   : > { %s1146_s12 = smov (!%p186_p4, %s979_s12), 1 }
   0xf   : > { %s903_s20 = smul.u32 144, %s1146_s12  ;;  %s797_s10 = sshll.u32 %s1146_s12, 5 }
  0x10   : > { %s1122_s17 = scalar_lea.vmem %s1140_s3, %s797_s10 }
  0x11   : > { %s1040_s23 = scalar_lea.vmem %s1137_s0, %s903_s20  ;;  %290 = vperm.xlu1 %930, %v260_v22   ;;  %285 = vperm.xlu0 %929, %v259_v23  }
  0x12   : > { %v931_v3 = vld [vmem:[%s1040_s23 + $0x40] sm:$0xff]   ;;  %v933_v5 = vld [vmem:[%s1040_s23 + $0x48] sm:$0xff]   ;;  %v935_v7 = vld [vmem:[%s1040_s23 + $0x50] sm:$0xff]  }
  0x13   : > { %v932_v4 = vld [vmem:[%s1040_s23] sm:$0xff]   ;;  %829 = vmatprep.subr.bf16.mxu0 %v931_v3  ;;  %887 = vmatprep.subr.bf16.mxu1 %v931_v3  ;;  %v934_v6 = vld [vmem:[%s1040_s23 + $0x8] sm:$0xff]   ;;  %v936_v8 = vld [vmem:[%s1040_s23 + $0x10] sm:$0xff]  }
  0x14   : > { %830 = vmatpush3.bf16.msra.mxu0 %v932_v4  ;;  %895 = vmatpush3.bf16.msra.mxu1 %v932_v4  ;;  %v937_v9 = vld [vmem:[%s1040_s23 + $0x58] sm:$0xff]   ;;  %v939_v11 = vld [vmem:[%s1040_s23 + $0x60] sm:$0xff]   ;;  %v941_v13 = vld [vmem:[%s1040_s23 + $0x68] sm:$0xff]  }
  0x15   : > { %831 = vmatprep.subr.bf16.mxu0 %v933_v5  ;;  %888 = vmatprep.subr.bf16.mxu1 %v933_v5  ;;  %v938_v10 = vld [vmem:[%s1040_s23 + $0x18] sm:$0xff]   ;;  %v940_v12 = vld [vmem:[%s1040_s23 + $0x20] sm:$0xff]   ;;  %v942_v14 = vld [vmem:[%s1040_s23 + $0x28] sm:$0xff]  }
  0x16   : > { %v943_v15 = vld [vmem:[%s1040_s23 + $0x70] sm:$0xff]   ;;  %v945_v21 = vld [vmem:[%s1040_s23 + $0x78] sm:$0xff]   ;;  %v953_v25 = vld [vmem:[%s1040_s23 + $0x80] sm:$0xff]   ;;  %300 = vperm.xlu1 %930, %v262_v28   ;;  %295 = vperm.xlu0 %929, %v261_v29  }
  0x17   : > { %v944_v20 = vld [vmem:[%s1040_s23 + $0x30] sm:$0xff]   ;;  %v946_v24 = vld [vmem:[%s1040_s23 + $0x38] sm:$0xff]   ;;  %v954_v31 = vld [vmem:[%s1040_s23 + $0x88] sm:$0xff]  }
  0x18   : > { %832 = vmatpush3.bf16.msra.mxu0 %v934_v6  ;;  %896 = vmatpush3.bf16.msra.mxu1 %v934_v6 }
  0x19   : > { %833 = vmatprep.subr.bf16.mxu0 %v935_v7  ;;  %889 = vmatprep.subr.bf16.mxu1 %v935_v7 }
  0x1c   : > { %834 = vmatpush3.bf16.msra.mxu0 %v936_v8  ;;  %897 = vmatpush3.bf16.msra.mxu1 %v936_v8 }
  0x1d   : > { %835 = vmatprep.subr.bf16.mxu0 %v937_v9  ;;  %890 = vmatprep.subr.bf16.mxu1 %v937_v9 }
  0x20   : > { %836 = vmatpush3.bf16.msra.mxu0 %v938_v10  ;;  %898 = vmatpush3.bf16.msra.mxu1 %v938_v10 }
  0x21   : > { %837 = vmatprep.subr.bf16.mxu0 %v939_v11  ;;  %891 = vmatprep.subr.bf16.mxu1 %v939_v11 }
  0x24   : > { %838 = vmatpush3.bf16.msra.mxu0 %v940_v12  ;;  %899 = vmatpush3.bf16.msra.mxu1 %v940_v12 }
  0x25   : > { %839 = vmatprep.subr.bf16.mxu0 %v941_v13  ;;  %892 = vmatprep.subr.bf16.mxu1 %v941_v13 }
  0x28   : > { %840 = vmatpush3.bf16.msra.mxu0 %v942_v14  ;;  %900 = vmatpush3.bf16.msra.mxu1 %v942_v14 }
  0x29   : > { %841 = vmatprep.subr.bf16.mxu0 %v943_v15  ;;  %893 = vmatprep.subr.bf16.mxu1 %v943_v15 }
  0x2c   : > { %842 = vmatpush3.bf16.msra.mxu0 %v944_v20  ;;  %901 = vmatpush3.bf16.msra.mxu1 %v944_v20 }
  0x2d   : > { %843 = vmatprep.subr.bf16.mxu0 %v945_v21  ;;  %894 = vmatprep.subr.bf16.mxu1 %v945_v21 }
  0x30   : > { %844 = vmatpush3.bf16.msra.mxu0 %v946_v24  ;;  %902 = vmatpush3.bf16.msra.mxu1 %v946_v24 }
  0x31   : > { %875 = vmatprep.subr.bf16.mxu1 %v953_v25 }
  0x33   : > { %517 = vmatmul.mubr.bf16.vlgmr.msra.gmra.mrb[0].mxu0 %v947_v26  ;;  %541 = vmatmul.mubr.bf16.vlgmr.msra.gmra.mrb[0].mxu1 %v950_v27 }
  0x34   : > { %876 = vmatpush3.bf16.msra.mxu1 %v953_v25  ;;  %524 = vmatprep.mubr.bf16.mxu0 %v955_v30 }
  0x35   : > { %877 = vmatprep.subr.bf16.mxu1 %v954_v31  ;;  %879 = vmatprep.mubr.msk.bf16.mxu1 %vm471_vm0, %v957_v32 }
  0x38   : > { %878 = vmatpush3.bf16.msra.mxu1 %v954_v31 }
  0x3b   : > { %525 = vmatmul.mubr.bf16.gmra.mrb[4].mxu0 %v958_v33  ;;  %880 = vmatmul.mubr.msk.bf16.vlgmr.msra.gmra.mrb[4].mxu1 %vm471_vm0, %v959_v34 }
  0x3c   : > { %532 = vmatprep.mubr.bf16.mxu0 %v960_v35  ;;  %883 = vmatprep.mubr.msk.bf16.mxu1 %vm471_vm0, %v962_v36 }
  0x43   : > { %533 = vmatmul.mubr.bf16.gmra.mrb[8].mxu0 %v963_v37  ;;  %884 = vmatmul.mubr.msk.bf16.gmra.mrb[8].mxu1 %vm471_vm0, %v964_v38 }
  0x88   : > { %v276_v39 = vpop.permute.xlu1 %275  ;;  %v266_v40 = vpop.permute.xlu0 %265 }
  0x8c   : > { %v281_v41 = vpop.permute.xlu1 %280  ;;  %v271_v42 = vpop.permute.xlu0 %270 }
  0x90   : > { %v286_v55 = vpop.permute.xlu0 %285  ;;  %v291_v56 = vpop.permute.xlu1 %290 }
  0x95   : > { %v296_v5 = vpop.permute.xlu0 %295  ;;  %v301_v9 = vpop.permute.xlu1 %300 }
 0x106   : > { %v845_v43 = vpop.f32.mrb[0].mxu0  ;;  %v863_v44 = vpop.f32.mrb[0].mxu1 }
 0x107   : > { %v846_v45 = vpop.f32.mrb[1].mxu0  ;;  %v864_v46 = vpop.f32.mrb[1].mxu1 }
 0x108   : > { %v847_v47 = vadd.f32 %v846_v45, %v845_v43  ;;  %v848_v48 = vpop.f32.mrb[2].mxu0  ;;  %v865_v49 = vadd.f32 %v864_v46, %v863_v44  ;;  %v866_v50 = vpop.f32.mrb[2].mxu1 }
 0x109   : > { %v849_v51 = vpop.f32.mrb[3].mxu0  ;;  %v867_v52 = vpop.f32.mrb[3].mxu1 }
 0x10a   : > { %v850_v53 = vadd.f32 %v849_v51, %v848_v48  ;;  %v868_v54 = vadd.f32 %v867_v52, %v866_v50  ;;  %v519_v59 = vadd.f32 %v847_v47, %v266_v40  ;;  %v543_v14 = vadd.f32 %v865_v49, %v296_v5 }
 0x10c   : > { %v522_v2 = vadd.f32 %v850_v53, %v271_v42  ;;  %v546_v19 = vadd.f32 %v868_v54, %v301_v9 }
 0x10e   : > { %v851_v57 = vpop.f32.mrb[4].mxu0  ;;  %v881_v58 = vpop.f32.mrb[4].mxu1 }
 0x10f   : > { %v852_v60 = vpop.f32.mrb[5].mxu0  ;;  %v583_v61 = vpop.f32.mrb[5].mxu1 }
 0x110   : > { %v853_v62 = vadd.f32 %v852_v60, %v851_v57  ;;  %v584_v63 = vadd.f32 %v583_v61, %v519_v59  ;;  %v854_v0 = vpop.f32.mrb[6].mxu0  ;;  %v882_v1 = vpop.f32.mrb[6].mxu1 }
 0x111   : > { %v855_v3 = vpop.f32.mrb[7].mxu0  ;;  %v586_v4 = vpop.f32.mrb[7].mxu1 }
 0x112   : > { %v527_v6 = vadd.f32 %v853_v62, %v276_v39  ;;  %v856_v7 = vadd.f32 %v855_v3, %v854_v0  ;;  %v587_v8 = vadd.f32 %v586_v4, %v522_v2  ;;  %v614_v11 = vmax.f32 %v584_v63, 0.0 }
 0x114   : > { %v592_v10 = vadd.f32 %v881_v58, %v527_v6  ;;  %v530_v12 = vadd.f32 %v856_v7, %v281_v41  ;;  %v615_v13 = vmax.f32 %v587_v8, 0.0 }
 0x116   : > { %v595_v15 = vadd.f32 %v882_v1, %v530_v12  ;;  %v809_v16 = vpack.c.bf16 %v615_v13, %v614_v11  ;;  %v857_v17 = vpop.f32.mrb[8].mxu0  ;;  %v885_v18 = vpop.f32.mrb[8].mxu1  ;;  %v616_v23 = vmax.f32 %v592_v10, 0.0 }
 0x117   : > { %v608_v20 = vadd.f32 %v885_v18, %v543_v14  ;;  %v858_v21 = vpop.f32.mrb[9].mxu0  ;;  %v599_v22 = vpop.f32.mrb[9].mxu1 }
 0x118   : > { %v617_v24 = vmax.f32 %v595_v15, 0.0  ;;  %810 = vst [vmem:[%s1122_s17] sm:$0xff] %v809_v16   ;;  %v859_v25 = vadd.f32 %v858_v21, %v857_v17  ;;  %v860_v26 = vpop.f32.mrb[10].mxu0  ;;  %v886_v27 = vpop.f32.mrb[10].mxu1 }
 0x119   : > { %v611_v28 = vadd.f32 %v886_v27, %v546_v19  ;;  %v861_v29 = vpop.f32.mrb[11].mxu0  ;;  %v602_v30 = vpop.f32.mrb[11].mxu1  ;;  %v620_v34 = vmax.f32 %v608_v20, 0.0 }
 0x11a   : > { %v814_v31 = vpack.c.bf16 %v617_v24, %v616_v23  ;;  %v535_v32 = vadd.f32 %v859_v25, %v286_v55  ;;  %v862_v33 = vadd.f32 %v861_v29, %v860_v26 }
 0x11b   : > { %v621_v35 = vmax.f32 %v611_v28, 0.0 }
 0x11c   : > { %826 = vst [vmem:[%s1122_s17 + $0x8] sm:$0xff] %v814_v31   ;;  %v600_v36 = vadd.f32 %v599_v22, %v535_v32  ;;  %v538_v37 = vadd.f32 %v862_v33, %v291_v56 }
 0x11d   : > { %v824_v38 = vpack.c.bf16 %v621_v35, %v620_v34 }
 0x11e   : > { %v603_v39 = vadd.f32 %v602_v30, %v538_v37  ;;  %v618_v40 = vmax.f32 %v600_v36, 0.0 }
 0x11f   : > { %828 = vst [vmem:[%s1122_s17 + $0x18] sm:$0xff] %v824_v38  }
 0x120   : > { %v619_v41 = vmax.f32 %v603_v39, 0.0 }
 0x122   : > { %v819_v42 = vpack.c.bf16 %v619_v41, %v618_v40 }
 0x124   : > { %827 = vst [vmem:[%s1122_s17 + $0x10] sm:$0xff] %v819_v42  }
 0x125 PF: > { %s13_s14 = sadd.s32 1, %s987_s14   ;;  %s1141_s12 = smov %s983_s13 }
 0x126   : > { %p10_p5 = scmp.ge.s32.totalorder %s13_s14, 4   ;;  %s1142_s13 = smov %s1144_s15 }
 0x128   :  { %12 = sbr.rel (!%p10_p5) target bundleno = 2 (0x2), region = 62 }

// kernel: _lambda_.7
= control target key start
LH: loop header
LB: loop body
LE: loop exit
PB: predicated region body
PF: predicated region fallthrough
CT: control target
= control target key end

     0   :  { %v686_v22 = vmov 1966171168   ;;  %v108_v24 = vlaneseq  ;;  %v687_v40 = vmov 0.0   ;;  %vm688_vm0 = vmmov 0   ;;  %s841_s1 = inlined_call_operand.vmem [shape: bf16[640,64], index: 1, kind: input, shape index: {}]   ;;  %s842_s0 = inlined_call_operand.vmem [shape: bf16[2,640], index: 0, kind: input, shape index: {}]   ;;  %s843_s2 = inlined_call_operand.vmem [shape: f32[1,64], index: 2, kind: input, shape index: {}]   ;;  %s844_s3 = inlined_call_operand.vmem [shape: f32[2,64], index: 3, kind: output, shape index: {}]  }
   0x1   :  { %v645_v0 = vld [vmem:[%s841_s1 + $0x40] sm:$0xff]   ;;  %v649_v4 = vld [vmem:[%s841_s1 + $0x48] sm:$0xff]   ;;  %v653_v8 = vld [vmem:[%s841_s1 + $0x50] sm:$0xff]   ;;  %v106_v23 = vunpack.c.l.s4 %v686_v22  ;;  %vm19_vm1 = vcmask 517120  }
   0x2   :  { %v646_v1 = vld [vmem:[%s841_s1 + $0xc0] sm:$0xff]   ;;  %569 = vmatprep.subr.bf16.mxu0 %v645_v0  ;;  %v650_v5 = vld [vmem:[%s841_s1 + $0xc8] sm:$0xff]   ;;  %v654_v9 = vld [vmem:[%s841_s1 + $0xd0] sm:$0xff]   ;;  %v109_v30 = vshrl.u32 %v108_v24, 7  ;;  %20 = vst.msk [vmem:[#allocation2] sm:$0x3] %vm19_vm1, %v687_v40 }
   0x3   :  { %v647_v2 = vld [vmem:[%s841_s1] sm:$0xff]   ;;  %591 = vmatprep.subr.bf16.mxu1 %v646_v1  ;;  %v651_v6 = vld [vmem:[%s841_s1 + $0x8] sm:$0xff]   ;;  %v655_v10 = vld [vmem:[%s841_s1 + $0x10] sm:$0xff]   ;;  %v107_v29 = vunpack.c.0.s8 %v106_v23 }
   0x4   :  { %v648_v3 = vld [vmem:[%s841_s1 + $0x80] sm:$0xff]   ;;  %570 = vmatpush3.bf16.msra.mxu0 %v647_v2  ;;  %v652_v7 = vld [vmem:[%s841_s1 + $0x88] sm:$0xff]   ;;  %v656_v11 = vld [vmem:[%s841_s1 + $0x90] sm:$0xff]  }
   0x5   :  { %592 = vmatpush3.bf16.msra.mxu1 %v648_v3  ;;  %571 = vmatprep.subr.bf16.mxu0 %v649_v4  ;;  %v657_v12 = vld [vmem:[%s841_s1 + $0x58] sm:$0xff]   ;;  %v661_v16 = vld [vmem:[%s841_s1 + $0x60] sm:$0xff]   ;;  %v665_v20 = vld [vmem:[%s841_s1 + $0x68] sm:$0xff]   ;;  %v110_v35 = vsub.s32 %v107_v29, %v109_v30 }
   0x6   :  { %593 = vmatprep.subr.bf16.mxu1 %v650_v5  ;;  %v658_v13 = vld [vmem:[%s841_s1 + $0xd8] sm:$0xff]   ;;  %v662_v17 = vld [vmem:[%s841_s1 + $0xe0] sm:$0xff]   ;;  %v666_v21 = vld [vmem:[%s841_s1 + $0xe8] sm:$0xff]  }
   0x7   :  { %v659_v14 = vld [vmem:[%s841_s1 + $0x18] sm:$0xff]   ;;  %v663_v18 = vld [vmem:[%s841_s1 + $0x20] sm:$0xff]   ;;  %v667_v25 = vld [vmem:[%s841_s1 + $0x28] sm:$0xff]  }
   0x8   :  { %572 = vmatpush3.bf16.msra.mxu0 %v651_v6  ;;  %v660_v15 = vld [vmem:[%s841_s1 + $0x98] sm:$0xff]   ;;  %v664_v19 = vld [vmem:[%s841_s1 + $0xa0] sm:$0xff]   ;;  %v668_v26 = vld [vmem:[%s841_s1 + $0xa8] sm:$0xff]  }
   0x9   :  { %594 = vmatpush3.bf16.msra.mxu1 %v652_v7  ;;  %573 = vmatprep.subr.bf16.mxu0 %v653_v8  ;;  %v669_v27 = vld [vmem:[%s841_s1 + $0x70] sm:$0xff]   ;;  %v673_v33 = vld [vmem:[%s841_s1 + $0x78] sm:$0xff]   ;;  %v22_v38 = vld [vmem:[%s842_s0] sm:$0x1f] }
   0xa   :  { %595 = vmatprep.subr.bf16.mxu1 %v654_v9  ;;  %v670_v28 = vld [vmem:[%s841_s1 + $0xf0] sm:$0xff]   ;;  %v674_v34 = vld [vmem:[%s841_s1 + $0xf8] sm:$0xff]   ;;  %v111_v39 = vrot.slane %v22_v38, %v110_v35  ;;  %v678_v44 = vld [vmem:[%s841_s1 + $0x100] sm:$0xff]   ;;  %v104_v52 = vcombine.high %v22_v38, %v22_v38 }
   0xb   :  { %v671_v31 = vld [vmem:[%s841_s1 + $0x30] sm:$0xff]   ;;  %v675_v36 = vld [vmem:[%s841_s1 + $0x38] sm:$0xff]   ;;  %v679_v47 = vld [vmem:[%s841_s1 + $0x108] sm:$0xff]  }
   0xc   :  { %574 = vmatpush3.bf16.msra.mxu0 %v655_v10  ;;  %v672_v32 = vld [vmem:[%s841_s1 + $0xb0] sm:$0xff]   ;;  %v676_v37 = vld [vmem:[%s841_s1 + $0xb8] sm:$0xff]   ;;  %v119_v41 = vcombine.high %v111_v39, %v111_v39  ;;  %v126_v42 = vrot.slane %v111_v39, %v110_v35  ;;  %v682_v50 = vld [vmem:[%s841_s1 + $0x120] sm:$0xff]   ;;  %v118_v54 = vrot.slane %v104_v52, %v110_v35 }
   0xd   :  { %596 = vmatpush3.bf16.msra.mxu1 %v656_v11  ;;  %575 = vmatprep.subr.bf16.mxu0 %v657_v12  ;;  %v680_v48 = vld [vmem:[%s841_s1 + $0x110] sm:$0xff]   ;;  %v681_v49 = vld [vmem:[%s841_s1 + $0x118] sm:$0xff]   ;;  %v683_v51 = vld [vmem:[%s841_s1 + $0x128] sm:$0xff]  }
   0xe   :  { %597 = vmatprep.subr.bf16.mxu1 %v658_v13  ;;  %v140_v43 = vrot.slane %v119_v41, %v110_v35  ;;  %v141_v45 = vcombine.high %v126_v42, %v126_v42  ;;  %v684_v53 = vld [vmem:[%s841_s1 + $0x130] sm:$0xff]   ;;  %v685_v55 = vld [vmem:[%s841_s1 + $0x138] sm:$0xff]   ;;  %v133_v56 = vrot.slane %v118_v54, %v110_v35  ;;  %v21_v4 = vld [vmem:[#allocation2] sm:$0x3] }
   0xf   :  { %v568_v11 = vld [vmem:[%s843_s2] ss:$0 sm:$0xff] }
  0x10   :  { %576 = vmatpush3.bf16.msra.mxu0 %v659_v14  ;;  %420 = vmatprep.mubr.bf16.mxu0 %v140_v43  ;;  %v142_v46 = vcombine.high %v140_v43, %v140_v43 }
  0x11   :  { %598 = vmatpush3.bf16.msra.mxu1 %v660_v15  ;;  %577 = vmatprep.subr.bf16.mxu0 %v661_v16 }
  0x12   :  { %599 = vmatprep.subr.bf16.mxu1 %v662_v17  ;;  %460 = vmatprep.mubr.bf16.mxu1 %v142_v46 }
  0x14   :  { %578 = vmatpush3.bf16.msra.mxu0 %v663_v18 }
  0x15   :  { %600 = vmatpush3.bf16.msra.mxu1 %v664_v19  ;;  %579 = vmatprep.subr.bf16.mxu0 %v665_v20 }
  0x16   :  { %601 = vmatprep.subr.bf16.mxu1 %v666_v21 }
  0x18   :  { %580 = vmatpush3.bf16.msra.mxu0 %v667_v25 }
  0x19   :  { %602 = vmatpush3.bf16.msra.mxu1 %v668_v26  ;;  %581 = vmatprep.subr.bf16.mxu0 %v669_v27 }
  0x1a   :  { %603 = vmatprep.subr.bf16.mxu1 %v670_v28 }
  0x1c   :  { %582 = vmatpush3.bf16.msra.mxu0 %v671_v31 }
  0x1d   :  { %604 = vmatpush3.bf16.msra.mxu1 %v672_v32  ;;  %583 = vmatprep.subr.bf16.mxu0 %v673_v33 }
  0x1e   :  { %605 = vmatprep.subr.bf16.mxu1 %v674_v34 }
  0x20   :  { %584 = vmatpush3.bf16.msra.mxu0 %v675_v36 }
  0x21   :  { %606 = vmatpush3.bf16.msra.mxu1 %v676_v37  ;;  %622 = vmatprep.subr.bf16.mxu0 %v687_v40 }
  0x23   :  { %421 = vmatmul.mubr.bf16.vlgmr.msra.gmra.mrb[0].mxu0 %v126_v42 }
  0x24   :  { %623 = vmatpush3.bf16.msra.mxu0 %v678_v44  ;;  %461 = vmatmul.mubr.bf16.vlgmr.msra.gmra.mrb[0].mxu1 %v141_v45 }
  0x25   :  { %624 = vmatprep.subr.bf16.mxu0 %v687_v40  ;;  %638 = vmatprep.mubr.msk.bf16.mxu0 %vm688_vm0, %v687_v40 }
  0x28   :  { %625 = vmatpush3.bf16.msra.mxu0 %v679_v47 }
  0x29   :  { %626 = vmatprep.subr.bf16.mxu0 %v687_v40 }
  0x2c   :  { %627 = vmatpush3.bf16.msra.mxu0 %v680_v48 }
  0x2d   :  { %628 = vmatprep.subr.bf16.mxu0 %v687_v40 }
  0x30   :  { %629 = vmatpush3.bf16.msra.mxu0 %v681_v49 }
  0x31   :  { %630 = vmatprep.subr.bf16.mxu0 %v687_v40 }
  0x34   :  { %631 = vmatpush3.bf16.msra.mxu0 %v682_v50 }
  0x35   :  { %632 = vmatprep.subr.bf16.mxu0 %v687_v40 }
  0x38   :  { %633 = vmatpush3.bf16.msra.mxu0 %v683_v51 }
  0x39   :  { %634 = vmatprep.subr.bf16.mxu0 %v687_v40 }
  0x3c   :  { %635 = vmatpush3.bf16.msra.mxu0 %v684_v53 }
  0x3d   :  { %636 = vmatprep.subr.bf16.mxu0 %v687_v40 }
  0x40   :  { %637 = vmatpush3.bf16.msra.mxu0 %v685_v55 }
  0x43   :  { %639 = vmatmul.mubr.bf16.vlgmr.msra.gmra.mrb[4].mxu0 %v133_v56 }
  0xf6   :  { %v585_v57 = vpop.f32.mrb[0].mxu0 }
  0xf7   :  { %v586_v58 = vpop.f32.mrb[1].mxu0  ;;  %v607_v59 = vpop.f32.mrb[0].mxu1 }
  0xf8   :  { %v587_v60 = vadd.f32 %v586_v58, %v585_v57  ;;  %v588_v61 = vpop.f32.mrb[2].mxu0  ;;  %v608_v62 = vpop.f32.mrb[1].mxu1 }
  0xf9   :  { %v589_v63 = vpop.f32.mrb[3].mxu0  ;;  %v609_v0 = vadd.f32 %v608_v62, %v607_v59  ;;  %v610_v1 = vpop.f32.mrb[2].mxu1 }
  0xfa   :  { %v611_v2 = vpop.f32.mrb[3].mxu1 }
  0xfb   :  { %v463_v3 = vadd.f32 %v609_v0, %v587_v60 }
 0x116   :  { %v502_v5 = vpop.f32.mrb[4].mxu0 }
 0x117   :  { %v503_v6 = vadd.f32 %v502_v5, %v463_v3  ;;  %v640_v7 = vpop.f32.mrb[5].mxu0 }
 0x118   :  { %v505_v8 = vpop.f32.mrb[6].mxu0 }
 0x119   :  { %v508_v9 = vadd.f32 %v503_v6, %v21_v4  ;;  %v641_v10 = vpop.f32.mrb[7].mxu0 }
 0x11b   :  { %510 = vst.msk [vmem:[#allocation2] sm:$0x3] %vm19_vm1, %v508_v9 }
 0x122   :  { %v514_v12 = vld [vmem:[#allocation2] sm:$0x3] }
 0x123   :  { %v522_v13 = vadd.f32 %v568_v11, %v514_v12 }
 0x125   :  { %523 = vst.msk [vmem:[%s844_s3] sm:$0x3] %vm19_vm1, %v522_v13 }

</bundles_post_ra>
